<compile_context>
chip_gen: v7x
topology: tpu7x:2x2x1
jax: 0.10.0
libtpu: 0.0.40
codegen_flags: <defaults>
</compile_context>

<pallas_src>
import functools

import jax
import jax.numpy as jnp
from jax import lax
from jax.experimental import pallas as pl
from jax.experimental.pallas import tpu as pltpu


def _round_up(x, m):
    return ((x + m - 1) // m) * m


def _generator_kernel(x_ref, w1_ref, b1_ref, w2_ref, b2_ref, o_ref,
                      *, normalize_output: bool):
    cdt = w1_ref.dtype
    xt = x_ref[...]
    if xt.dtype != cdt:
        # Fused activation cast (no separate XLA pass / extra HBM traffic).
        xt = xt.astype(cdt)
    # fc1: x @ W1 + b1   (MXU, f32 accumulation; bias stays f32)
    h = jnp.dot(xt, w1_ref[...], preferred_element_type=jnp.float32) + b1_ref[...]
    # ReLU; re-quantize to the compute dtype before the second MXU op.
    h = jnp.maximum(h, 0.0).astype(cdt)
    # fc2: relu(h) @ W2 + b2
    y = jnp.dot(h, w2_ref[...], preferred_element_type=jnp.float32) + b2_ref[...]
    if normalize_output:
        # y / ||y||_2 per row as y * rsqrt(sum(y^2)): transcendental on the EUP
        # slot, divide becomes a VPU multiply.  No epsilon (matches torch.norm).
        inv = lax.rsqrt(jnp.sum(y * y, axis=1, keepdims=True))
        y = y * inv
    o_ref[...] = y.astype(o_ref.dtype)


def _const_index_map(ndim):
    return lambda *args: (0,) * ndim


def generator_forward(x, w1_t, b1, w2_t, b2, *, normalize_output=False,
                      block_b=None):
    """Generator forward.

    x:    [B, 3*D]   activations (storage dtype; cast to w1_t.dtype in-kernel)
    w1_t: [3*D, D]   fc1 weight, pre-transposed to [in, out], in compute dtype
    b1:   [D] or [1, D]   fc1 bias
    w2_t: [D, D]     fc2 weight, pre-transposed, in compute dtype
    b2:   [D] or [1, D]   fc2 bias
    Output dtype follows x.dtype (store x in bf16 upstream for bf16 I/O).
    """
    B, in_dim = x.shape
    D = w1_t.shape[1]
    assert w1_t.shape[0] == in_dim and in_dim == 3 * D and w2_t.shape == (D, D)

    compute_dtype = w1_t.dtype
    out_dtype = x.dtype
    c_sz = jnp.dtype(compute_dtype).itemsize
    x_sz = jnp.dtype(x.dtype).itemsize
    o_sz = jnp.dtype(out_dtype).itemsize

    w2c = w2_t.astype(compute_dtype)          # no-op when already hoisted
    b1f = b1.reshape(1, D).astype(jnp.float32)
    b2f = b2.reshape(1, D).astype(jnp.float32)

    # --- VMEM budget: derive from hardware, keep ~25% headroom for Mosaic
    # internal scratch / semaphores (critical on v7x: 64 MiB per TensorCore).
    try:
        phys = getattr(pltpu.get_tpu_info(), "vmem_capacity_bytes",
                       64 * 1024 * 1024)
    except Exception:
        phys = 64 * 1024 * 1024
    budget = (phys * 3) // 4

    sublane = 16 if x_sz < 4 else 8
    w_bytes = 2 * (in_dim * D + D * D) * c_sz   # resident weights (x2 = worst case)

    def _vmem_est(tb):
        return (2 * tb * in_dim * x_sz          # x tile, double-buffered
                + tb * in_dim * c_sz            # in-kernel cast copy of x tile
                + 2 * tb * D * o_sz             # out tile, double-buffered
                + w_bytes
                + 4 * D * 4                     # biases (f32)
                + 4 * tb * D * 4                # h / y f32 intermediates (+slack)
                + 2 * 1024 * 1024)              # fixed headroom

    if block_b is None:
        # Large tiles amortize the ~0.35 us per-grid-step overhead; shrink only
        # when the working set would exceed the per-generation VMEM budget.
        block_b = min(1024, _round_up(B, sublane))
        while block_b > sublane and _vmem_est(block_b) > budget:
            block_b = _round_up(block_b // 2, sublane)
    block_b = max(sublane, _round_up(block_b, sublane))
    if block_b >= B:
        block_b = B                             # single full block (always legal)

    grid = (pl.cdiv(B, block_b),)               # partial tail handled by Pallas
    vmem_limit = int(min(max(_vmem_est(block_b), 16 * 1024 * 1024), budget))

    kernel = functools.partial(_generator_kernel,
                               normalize_output=normalize_output)

    def _build(single_buffer_resident):
        def resident(shape):
            if single_buffer_resident:
                return pl.BlockSpec(shape, _const_index_map(len(shape)),
                                    pipeline_mode=pl.Buffered(1))
            return pl.BlockSpec(shape, _const_index_map(len(shape)))

        in_specs = [
            pl.BlockSpec((block_b, in_dim), lambda i: (i, 0)),   # x: streamed
            resident((in_dim, D)),                               # W1: resident
            resident((1, D)),                                    # b1: resident
            resident((D, D)),                                    # W2: resident
            resident((1, D)),                                    # b2: resident
        ]
        out_specs = pl.BlockSpec((block_b, D), lambda i: (i, 0))
        return pl.pallas_call(
            kernel,
            out_shape=jax.ShapeDtypeStruct((B, D), out_dtype),
            grid_spec=pltpu.PrefetchScalarGridSpec(
                num_scalar_prefetch=0, grid=grid,
                in_specs=in_specs, out_specs=out_specs),
            compiler_params=pltpu.CompilerParams(
                dimension_semantics=("parallel",),   # megacore sharding on v7x
                vmem_limit_bytes=vmem_limit),
        )

    args = (x, w1_t, b1f, w2c, b2f)
    if hasattr(pl, "Buffered"):
        try:
            # Constant-index operands never need double buffers; halves their
            # VMEM footprint (matters for large D on v7x).
            return _build(True)(*args)
        except Exception:
            pass  # fall back to default double-buffered resident operands
    return _build(False)(*args)


def init_generator_params(key, out_dim):
    """Parameter init matching the PyTorch module's shapes.

    fc1.weight: [out_dim, 3*out_dim] (std=0.02 normal), fc1.bias: [out_dim]
    fc2.weight: [out_dim, out_dim]   (std=0.02 normal), fc2.bias: [out_dim]
    Weights are returned pre-transposed ([in, out]) for the kernel.
    """
    k1, k2, k3, k4 = jax.random.split(key, 4)
    in1 = out_dim * 3
    w1 = 0.02 * jax.random.normal(k1, (out_dim, in1), jnp.float32)
    w2 = 0.02 * jax.random.normal(k2, (out_dim, out_dim), jnp.float32)
    # PyTorch Linear bias default: U(-1/sqrt(fan_in), 1/sqrt(fan_in))
    b1 = jax.random.uniform(k3, (out_dim,), jnp.float32,
                            -1.0 / jnp.sqrt(in1), 1.0 / jnp.sqrt(in1))
    b2 = jax.random.uniform(k4, (out_dim,), jnp.float32,
                            -1.0 / jnp.sqrt(out_dim), 1.0 / jnp.sqrt(out_dim))
    return (w1.T, b1.reshape(1, out_dim), w2.T, b2.reshape(1, out_dim))


def generator_ref(x, w1_t, b1, w2_t, b2, *, normalize_output=False):
    """Pure-JAX reference with the same dtype policy as the kernel."""
    cdt = w1_t.dtype
    D = w1_t.shape[1]
    h = jnp.dot(x.astype(cdt), w1_t, preferred_element_type=jnp.float32) \
        + b1.reshape(1, D).astype(jnp.float32)
    h = jnp.maximum(h, 0.0).astype(cdt)
    y = jnp.dot(h, w2_t.astype(cdt), preferred_element_type=jnp.float32) \
        + b2.reshape(1, D).astype(jnp.float32)
    if normalize_output:
        y = y * lax.rsqrt(jnp.sum(y * y, axis=1, keepdims=True))
    return y.astype(x.dtype)


if __name__ == "__main__":
    out_dim = 128          # small but lane-aligned stand-in for 512
    batch = 8

    key = jax.random.PRNGKey(0)
    kx, kp, kt = jax.random.split(key, 3)
    x = jax.random.normal(kx, (batch, out_dim * 3), jnp.float32)
    w1_t, b1, w2_t, b2 = init_generator_params(kp, out_dim)

    # --- exact f32 path (both normalize settings) ---
    for norm in (False, True):
        out = jax.block_until_ready(
            generator_forward(x, w1_t, b1, w2_t, b2, normalize_output=norm))
        ref = generator_ref(x, w1_t, b1, w2_t, b2, normalize_output=norm)
        assert out.shape == (batch, out_dim)
        assert jnp.allclose(out, ref, atol=1e-4, rtol=1e-4), \
            f"f32 mismatch (normalize={norm})"

    # --- bf16 MXU path: weights cast to bf16 ONCE (hoisted out of forward) ---
    w1_bf = w1_t.astype(jnp.bfloat16)
    w2_bf = w2_t.astype(jnp.bfloat16)
    for norm in (False, True):
        out = jax.block_until_ready(
            generator_forward(x, w1_bf, b1, w2_bf, b2, normalize_output=norm))
        ref = generator_ref(x, w1_bf, b1, w2_bf, b2, normalize_output=norm)
        assert out.shape == (batch, out_dim)
        assert jnp.allclose(out, ref, atol=2e-2, rtol=2e-2), \
            f"bf16 mismatch (normalize={norm})"

    # --- ragged batch: cdiv grid with masked partial tail (no pad / slice) ---
    bt = 200
    xt = jax.random.normal(kt, (bt, out_dim * 3), jnp.float32)
    out = jax.block_until_ready(
        generator_forward(xt, w1_bf, b1, w2_bf, b2,
                          normalize_output=True, block_b=64))
    ref = generator_ref(xt, w1_bf, b1, w2_bf, b2, normalize_output=True)
    assert out.shape == (bt, out_dim)
    assert jnp.allclose(out, ref, atol=2e-2, rtol=2e-2), "ragged-tail mismatch"

    print("KERNEL_OK")
</pallas_src>

<mosaic_0001>
module attributes {stable_mosaic.version = 11 : i64} {
  func.func @_generator_kernel(%arg0: i32, %arg1: memref<8x384xf32, #tpu.memory_space<vmem>>, %arg2: memref<384x128xf32, #tpu.memory_space<vmem>>, %arg3: memref<1x128xf32, #tpu.memory_space<vmem>>, %arg4: memref<128x128xf32, #tpu.memory_space<vmem>>, %arg5: memref<1x128xf32, #tpu.memory_space<vmem>>, %arg6: memref<8x128xf32, #tpu.memory_space<vmem>>) attributes {dimension_semantics = [#tpu.dimension_semantics<parallel>], iteration_bounds = array<i64: 1>, scalar_prefetch = 0 : i64, scratch_operands = 0 : i64, tpu.core_type = #tpu.core_type<tc>, window_params = [{transform_indices = @transform_0, window_bounds = array<i64: 8, 384>}, {pipeline_mode = #tpu.pipeline_mode<synchronous>, transform_indices = @transform_1, window_bounds = array<i64: 384, 128>}, {pipeline_mode = #tpu.pipeline_mode<synchronous>, transform_indices = @transform_2, window_bounds = array<i64: 1, 128>}, {pipeline_mode = #tpu.pipeline_mode<synchronous>, transform_indices = @transform_3, window_bounds = array<i64: 128, 128>}, {pipeline_mode = #tpu.pipeline_mode<synchronous>, transform_indices = @transform_4, window_bounds = array<i64: 1, 128>}, {transform_indices = @transform_5, window_bounds = array<i64: 8, 128>}]} {
    %c0 = arith.constant 0 : index
    %c0_0 = arith.constant 0 : index
    %0 = vector.load %arg1[%c0, %c0_0] : memref<8x384xf32, #tpu.memory_space<vmem>>, vector<8x384xf32>
    %c0_1 = arith.constant 0 : index
    %c0_2 = arith.constant 0 : index
    %1 = vector.load %arg2[%c0_1, %c0_2] : memref<384x128xf32, #tpu.memory_space<vmem>>, vector<384x128xf32>
    %cst = arith.constant dense<0.000000e+00> : vector<8x128xf32>
    %2 = tpu.matmul %0, %1, %cst {dimension_numbers = #tpu.dot_dimension_numbers<[1], [0], [0], [1], [0, 0, 1, 1], [], []>} : vector<8x384xf32>, vector<384x128xf32>, vector<8x128xf32> -> vector<8x128xf32>
    %c0_3 = arith.constant 0 : index
    %c0_4 = arith.constant 0 : index
    %3 = vector.load %arg3[%c0_3, %c0_4] : memref<1x128xf32, #tpu.memory_space<vmem>>, vector<1x128xf32>
    %4 = vector.broadcast %3 : vector<1x128xf32> to vector<8x128xf32>
    %5 = arith.addf %2, %4 : vector<8x128xf32>
    %cst_5 = arith.constant 0.000000e+00 : f32
    %6 = vector.broadcast %cst_5 : f32 to vector<8x128xf32>
    %7 = arith.maximumf %5, %6 : vector<8x128xf32>
    %c0_6 = arith.constant 0 : index
    %c0_7 = arith.constant 0 : index
    %8 = vector.load %arg4[%c0_6, %c0_7] : memref<128x128xf32, #tpu.memory_space<vmem>>, vector<128x128xf32>
    %cst_8 = arith.constant dense<0.000000e+00> : vector<8x128xf32>
    %9 = tpu.matmul %7, %8, %cst_8 {dimension_numbers = #tpu.dot_dimension_numbers<[1], [0], [0], [1], [0, 0, 1, 1], [], []>} : vector<8x128xf32>, vector<128x128xf32>, vector<8x128xf32> -> vector<8x128xf32>
    %c0_9 = arith.constant 0 : index
    %c0_10 = arith.constant 0 : index
    %10 = vector.load %arg5[%c0_9, %c0_10] : memref<1x128xf32, #tpu.memory_space<vmem>>, vector<1x128xf32>
    %11 = vector.broadcast %10 : vector<1x128xf32> to vector<8x128xf32>
    %12 = arith.addf %9, %11 : vector<8x128xf32>
    %c0_11 = arith.constant 0 : index
    %c0_12 = arith.constant 0 : index
    %13 = vector.load %arg6[%c0_11, %c0_12] : memref<8x128xf32, #tpu.memory_space<vmem>>, vector<8x128xf32>
    tpu.vector_store %arg6[%c0_11, %c0_12], %12 {strides = array<i32>} : memref<8x128xf32, #tpu.memory_space<vmem>>, vector<8x128xf32>,
    return
  }
  func.func @transform_0(%arg0: i32) -> (i32, i32) {
    %c0_i32 = arith.constant 0 : i32
    %c0_i32_0 = arith.constant 0 : i32
    return %arg0, %c0_i32 : i32, i32
  }
  func.func @transform_1(%arg0: i32) -> (i32, i32) {
    %c0_i32 = arith.constant 0 : i32
    %c0_i32_0 = arith.constant 0 : i32
    %c0_i32_1 = arith.constant 0 : i32
    return %c0_i32, %c0_i32_0 : i32, i32
  }
  func.func @transform_2(%arg0: i32) -> (i32, i32) {
    %c0_i32 = arith.constant 0 : i32
    %c0_i32_0 = arith.constant 0 : i32
    %c0_i32_1 = arith.constant 0 : i32
    return %c0_i32, %c0_i32_0 : i32, i32
  }
  func.func @transform_3(%arg0: i32) -> (i32, i32) {
    %c0_i32 = arith.constant 0 : i32
    %c0_i32_0 = arith.constant 0 : i32
    %c0_i32_1 = arith.constant 0 : i32
    return %c0_i32, %c0_i32_0 : i32, i32
  }
  func.func @transform_4(%arg0: i32) -> (i32, i32) {
    %c0_i32 = arith.constant 0 : i32
    %c0_i32_0 = arith.constant 0 : i32
    %c0_i32_1 = arith.constant 0 : i32
    return %c0_i32, %c0_i32_0 : i32, i32
  }
  func.func @transform_5(%arg0: i32) -> (i32, i32) {
    %c0_i32 = arith.constant 0 : i32
    %c0_i32_0 = arith.constant 0 : i32
    return %arg0, %c0_i32 : i32, i32
  }
}

module attributes {stable_mosaic.version = 11 : i64} {
  func.func @_generator_kernel(%arg0: i32, %arg1: memref<8x384xf32, #tpu.memory_space<vmem>>, %arg2: memref<384x128xf32, #tpu.memory_space<vmem>>, %arg3: memref<1x128xf32, #tpu.memory_space<vmem>>, %arg4: memref<128x128xf32, #tpu.memory_space<vmem>>, %arg5: memref<1x128xf32, #tpu.memory_space<vmem>>, %arg6: memref<8x128xf32, #tpu.memory_space<vmem>>) attributes {dimension_semantics = [#tpu.dimension_semantics<parallel>], iteration_bounds = array<i64: 1>, scalar_prefetch = 0 : i64, scratch_operands = 0 : i64, tpu.core_type = #tpu.core_type<tc>, window_params = [{transform_indices = @transform_0, window_bounds = array<i64: 8, 384>}, {pipeline_mode = #tpu.pipeline_mode<synchronous>, transform_indices = @transform_1, window_bounds = array<i64: 384, 128>}, {pipeline_mode = #tpu.pipeline_mode<synchronous>, transform_indices = @transform_2, window_bounds = array<i64: 1, 128>}, {pipeline_mode = #tpu.pipeline_mode<synchronous>, transform_indices = @transform_3, window_bounds = array<i64: 128, 128>}, {pipeline_mode = #tpu.pipeline_mode<synchronous>, transform_indices = @transform_4, window_bounds = array<i64: 1, 128>}, {transform_indices = @transform_5, window_bounds = array<i64: 8, 128>}]} {
    %c0 = arith.constant 0 : index
    %c0_0 = arith.constant 0 : index
    %0 = vector.load %arg1[%c0, %c0_0] : memref<8x384xf32, #tpu.memory_space<vmem>>, vector<8x384xf32>
    %c0_1 = arith.constant 0 : index
    %c0_2 = arith.constant 0 : index
    %1 = vector.load %arg2[%c0_1, %c0_2] : memref<384x128xf32, #tpu.memory_space<vmem>>, vector<384x128xf32>
    %cst = arith.constant dense<0.000000e+00> : vector<8x128xf32>
    %2 = tpu.matmul %0, %1, %cst {dimension_numbers = #tpu.dot_dimension_numbers<[1], [0], [0], [1], [0, 0, 1, 1], [], []>} : vector<8x384xf32>, vector<384x128xf32>, vector<8x128xf32> -> vector<8x128xf32>
    %c0_3 = arith.constant 0 : index
    %c0_4 = arith.constant 0 : index
    %3 = vector.load %arg3[%c0_3, %c0_4] : memref<1x128xf32, #tpu.memory_space<vmem>>, vector<1x128xf32>
    %4 = vector.broadcast %3 : vector<1x128xf32> to vector<8x128xf32>
    %5 = arith.addf %2, %4 : vector<8x128xf32>
    %cst_5 = arith.constant 0.000000e+00 : f32
    %6 = vector.broadcast %cst_5 : f32 to vector<8x128xf32>
    %7 = arith.maximumf %5, %6 : vector<8x128xf32>
    %c0_6 = arith.constant 0 : index
    %c0_7 = arith.constant 0 : index
    %8 = vector.load %arg4[%c0_6, %c0_7] : memref<128x128xf32, #tpu.memory_space<vmem>>, vector<128x128xf32>
    %cst_8 = arith.constant dense<0.000000e+00> : vector<8x128xf32>
    %9 = tpu.matmul %7, %8, %cst_8 {dimension_numbers = #tpu.dot_dimension_numbers<[1], [0], [0], [1], [0, 0, 1, 1], [], []>} : vector<8x128xf32>, vector<128x128xf32>, vector<8x128xf32> -> vector<8x128xf32>
    %c0_9 = arith.constant 0 : index
    %c0_10 = arith.constant 0 : index
    %10 = vector.load %arg5[%c0_9, %c0_10] : memref<1x128xf32, #tpu.memory_space<vmem>>, vector<1x128xf32>
    %11 = vector.broadcast %10 : vector<1x128xf32> to vector<8x128xf32>
    %12 = arith.addf %9, %11 : vector<8x128xf32>
    %c0_11 = arith.constant 0 : index
    %c0_12 = arith.constant 0 : index
    %13 = vector.load %arg6[%c0_11, %c0_12] : memref<8x128xf32, #tpu.memory_space<vmem>>, vector<8x128xf32>
    tpu.vector_store %arg6[%c0_11, %c0_12], %12 {strides = array<i32>} : memref<8x128xf32, #tpu.memory_space<vmem>>, vector<8x128xf32>,
    return
  }
  func.func @transform_0(%arg0: i32) -> (i32, i32) {
    %c0_i32 = arith.constant 0 : i32
    %c0_i32_0 = arith.constant 0 : i32
    return %arg0, %c0_i32 : i32, i32
  }
  func.func @transform_1(%arg0: i32) -> (i32, i32) {
    %c0_i32 = arith.constant 0 : i32
    %c0_i32_0 = arith.constant 0 : i32
    %c0_i32_1 = arith.constant 0 : i32
    return %c0_i32, %c0_i32_0 : i32, i32
  }
  func.func @transform_2(%arg0: i32) -> (i32, i32) {
    %c0_i32 = arith.constant 0 : i32
    %c0_i32_0 = arith.constant 0 : i32
    %c0_i32_1 = arith.constant 0 : i32
    return %c0_i32, %c0_i32_0 : i32, i32
  }
  func.func @transform_3(%arg0: i32) -> (i32, i32) {
    %c0_i32 = arith.constant 0 : i32
    %c0_i32_0 = arith.constant 0 : i32
    %c0_i32_1 = arith.constant 0 : i32
    return %c0_i32, %c0_i32_0 : i32, i32
  }
  func.func @transform_4(%arg0: i32) -> (i32, i32) {
    %c0_i32 = arith.constant 0 : i32
    %c0_i32_0 = arith.constant 0 : i32
    %c0_i32_1 = arith.constant 0 : i32
    return %c0_i32, %c0_i32_0 : i32, i32
  }
  func.func @transform_5(%arg0: i32) -> (i32, i32) {
    %c0_i32 = arith.constant 0 : i32
    %c0_i32_0 = arith.constant 0 : i32
    return %arg0, %c0_i32 : i32, i32
  }
}

</mosaic_0001>

<bundles_post_ra>
// kernel: tpu_custom_call.1
= control target key start
LH: loop header
LB: loop body
LE: loop exit
PB: predicated region body
PF: predicated region fallthrough
CT: control target
= control target key end

     0   :  { %10 = vsyncpa [#allocation3], 0  ;;  %s812_s0 = inlined_call_operand.hbm [shape: f32[8,384], index: 0, kind: input, shape index: {}]   ;;  %s813_s1 = inlined_call_operand.hbm [shape: f32[384,128], index: 1, kind: input, shape index: {}]   ;;  %s814_s2 = inlined_call_operand.vmem [shape: f32[1,128], index: 2, kind: input, shape index: {}]   ;;  %s815_s3 = inlined_call_operand.hbm [shape: f32[128,128], index: 3, kind: input, shape index: {}]   ;;  %s816_s4 = inlined_call_operand.vmem [shape: f32[1,128], index: 4, kind: input, shape index: {}]   ;;  %s817_s5 = inlined_call_operand.hbm [shape: f32[8,128], index: 5, kind: output, shape index: {}]  }
   0x1   :  { %11 = vsyncpa [#allocation6], 0 }
   0x2   :  { %12 = vsyncpa [#allocation4], 0  ;;  %s693_s18 = smov [#allocation5]   ;;  %s599_s22 = scalar_lea.hbm %s813_s1, 6144 }
   0x3   :  { %s28_s19 = sshll.u32 %s693_s18, 4  ;;  %p600_p0 = scmp.ne.s32.totalorder %s813_s1, %s599_s22  ;;  %s29_s19 = int_to_ptr.vmem [resolvable:$true] %s28_s19 }
   0x4   :  { %p603_p1 = scmp.lt.u32.totalorder %s599_s22, %s813_s1 }
   0x6   :  { %p605_p2 = pnand %p603_p1, %p600_p0 }
   0x8   :  { %608 = shalt.err (!%p605_p2)
}
   0x9   :  { %s609_s27 = scalar_lea.vmem %s29_s19, 6144  ;;  %p614_p4 = scmp.lt.s32.totalorder %s29_s19, %s29_s19 }
   0xa   :  { %p610_p3 = scmp.ne.s32.totalorder %s29_s19, %s609_s27  ;;  %p615_p5 = scmp.lt.s32.totalorder %s609_s27, %s609_s27 }
   0xc   :  { %p616_p6 = por %p615_p5, %p614_p4 }
   0xe   :  { %p617_p7 = pnand %p616_p6, %p610_p3 }
  0x10   :  { %620 = shalt.err (!%p617_p7)
}
  0x11   :  { %s694_s28 = smov 128   ;;  %s695_s29 = smov 8  }
  0x12   :  { %34 = dma.hbm_to_vmem [thread:$0]  %s813_s1, 6144, %s29_s19, [#allocation6], %s694_s28, %s694_s28, %s695_s29  }
  0x13   :  { %s696_s7 = smov [#allocation2]   ;;  %s697_s9 = smov [#allocation7]  }
  0x14   :  { %s19_s8 = sshll.u32 %s696_s7, 4  ;;  %s42_s10 = sshll.u32 %s697_s9, 4  ;;  %s20_s8 = int_to_ptr.vmem [resolvable:$true] %s19_s8  ;;  %s43_s10 = int_to_ptr.vmem [resolvable:$true] %s42_s10 }
  0x15   :  { %s621_s13 = scalar_lea.hbm %s812_s0, 384 }
  0x16   :  { %p622_p8 = scmp.ne.s32.totalorder %s812_s0, %s621_s13  ;;  %p625_p9 = scmp.lt.u32.totalorder %s621_s13, %s812_s0 }
  0x18   :  { %p627_p10 = pnand %p625_p9, %p622_p8 }
  0x1a   :  { %630 = shalt.err (!%p627_p10)
}
  0x1b   :  { %s631_s1 = scalar_lea.vmem %s20_s8, 384  ;;  %p636_p12 = scmp.lt.s32.totalorder %s20_s8, %s20_s8 }
  0x1c   :  { %p632_p11 = scmp.ne.s32.totalorder %s20_s8, %s631_s1  ;;  %p637_p13 = scmp.lt.s32.totalorder %s631_s1, %s631_s1 }
  0x1e   :  { %p638_p0 = por %p637_p13, %p636_p12 }
  0x20   :  { %p639_p1 = pnand %p638_p0, %p632_p11 }
  0x22   :  { %642 = shalt.err (!%p639_p1)
}
  0x23   :  { %22 = dma.hbm_to_vmem [thread:$0]  %s812_s0, 384, %s20_s8, [#allocation3]  }
  0x24   :  { %s643_s22 = scalar_lea.hbm %s815_s3, 2048 }
  0x25   :  { %p644_p2 = scmp.ne.s32.totalorder %s815_s3, %s643_s22  ;;  %p647_p3 = scmp.lt.u32.totalorder %s643_s22, %s815_s3 }
  0x27   :  { %p649_p4 = pnand %p647_p3, %p644_p2 }
  0x29   :  { %652 = shalt.err (!%p649_p4)
}
  0x2a   :  { %s653_s27 = scalar_lea.vmem %s43_s10, 2048  ;;  %p658_p6 = scmp.lt.s32.totalorder %s43_s10, %s43_s10 }
  0x2b   :  { %p654_p5 = scmp.ne.s32.totalorder %s43_s10, %s653_s27  ;;  %p659_p7 = scmp.lt.s32.totalorder %s653_s27, %s653_s27 }
  0x2d   :  { %p660_p8 = por %p659_p7, %p658_p6 }
  0x2f   :  { %p661_p9 = pnand %p660_p8, %p654_p5 }
  0x31   :  { %664 = shalt.err (!%p661_p9)
}
  0x32   :  { %48 = dma.hbm_to_vmem [thread:$0]  %s815_s3, 2048, %s43_s10, [#allocation6], %s694_s28, %s694_s28, %s695_s29  }
  0x33   :  { %687 = dma.done.wait [#allocation3], 384  }
  0x34   :  { %688 = vsyncadd [#allocation3], 4294966912 }
  0x35   :  { %689 = dma.done.wait [#allocation6], 8192  }
  0x36   :  { %690 = vsyncadd [#allocation6], 4294959104  ;;  %v698_v0 = vmov 0.0|0.0   ;;  %vm699_vm0 = vmmov 0   ;;  %v700_v1 = vmov 0.0   ;;  %v79_v2 = vld [vmem:[#allocation5 + $0x80] sm:$0xff] }
  0x37   :  { %542 = vmatprep.subr.bf16.mxu1 %v698_v0  ;;  %472 = vmatprep.mubr.msk.f32.mxu1 %vm699_vm0, %v700_v1  ;;  %v80_v3 = vld [vmem:[#allocation5 + $0x88] sm:$0xff]  ;;  %v63_v4 = vld [vmem:[#allocation5] sm:$0xff]  ;;  %v81_v7 = vld [vmem:[#allocation5 + $0x90] sm:$0xff]  ;;  %s701_s7 = smov [#allocation8]  }
  0x38   :  { %v510_v5 = vpack.c.bf16 %v80_v3, %v79_v2  ;;  %v64_v6 = vld [vmem:[#allocation5 + $0x8] sm:$0xff]  ;;  %v82_v8 = vld [vmem:[#allocation5 + $0x98] sm:$0xff]  ;;  %v65_v11 = vld [vmem:[#allocation5 + $0x10] sm:$0xff]  ;;  %s359_s8 = sshll.u32 %s701_s7, 4  ;;  %s360_s8 = int_to_ptr.vmem [resolvable:$true] %s359_s8 }
  0x39   :  { %v512_v9 = vpack.c.bf16 %v64_v6, %v63_v4  ;;  %v514_v10 = vpack.c.bf16 %v82_v8, %v81_v7  ;;  %v66_v12 = vld [vmem:[#allocation5 + $0x18] sm:$0xff]  ;;  %v95_v13 = vld [vmem:[#allocation5 + $0x100] sm:$0xff]  ;;  %v96_v14 = vld [vmem:[#allocation5 + $0x108] sm:$0xff]  ;;  %s665_s9 = scalar_lea.vmem %s360_s8, 128  ;;  %p670_p11 = scmp.lt.s32.totalorder %s360_s8, %s360_s8 }
  0x3a   :  { %511 = vmatprep.subr.bf16.mxu0 %v510_v5  ;;  %v83_v15 = vld [vmem:[#allocation5 + $0xa0] sm:$0xff]  ;;  %v84_v16 = vld [vmem:[#allocation5 + $0xa8] sm:$0xff]  ;;  %v516_v17 = vpack.c.bf16 %v66_v12, %v65_v11  ;;  %v543_v18 = vpack.c.bf16 %v96_v14, %v95_v13  ;;  %v97_v19 = vld [vmem:[#allocation5 + $0x110] sm:$0xff]  ;;  %p666_p10 = scmp.ne.s32.totalorder %s360_s8, %s665_s9  ;;  %p671_p12 = scmp.lt.s32.totalorder %s665_s9, %s665_s9 }
  0x3b   :  { %513 = vmatpush3.bf16.msra.mxu0 %v512_v9  ;;  %v518_v20 = vpack.c.bf16 %v84_v16, %v83_v15  ;;  %v67_v21 = vld [vmem:[#allocation5 + $0x20] sm:$0xff]  ;;  %v68_v22 = vld [vmem:[#allocation5 + $0x28] sm:$0xff]  ;;  %v98_v23 = vld [vmem:[#allocation5 + $0x118] sm:$0xff] }
  0x3c   :  { %515 = vmatprep.subr.bf16.mxu0 %v514_v10  ;;  %544 = vmatpush3.bf16.msra.mxu1 %v543_v18  ;;  %v546_v24 = vpack.c.bf16 %v98_v23, %v97_v19  ;;  %v85_v25 = vld [vmem:[#allocation5 + $0xb0] sm:$0xff]  ;;  %v86_v26 = vld [vmem:[#allocation5 + $0xb8] sm:$0xff]  ;;  %v99_v27 = vld [vmem:[#allocation5 + $0x120] sm:$0xff]  ;;  %v520_v29 = vpack.c.bf16 %v68_v22, %v67_v21  ;;  %p672_p13 = por %p671_p12, %p670_p11 }
  0x3d   :  { %545 = vmatprep.subr.bf16.mxu1 %v698_v0  ;;  %v100_v28 = vld [vmem:[#allocation5 + $0x128] sm:$0xff]  ;;  %v522_v30 = vpack.c.bf16 %v86_v26, %v85_v25  ;;  %v69_v31 = vld [vmem:[#allocation5 + $0x30] sm:$0xff]  ;;  %v70_v32 = vld [vmem:[#allocation5 + $0x38] sm:$0xff] }
  0x3e   :  { %v549_v33 = vpack.c.bf16 %v100_v28, %v99_v27  ;;  %v87_v34 = vld [vmem:[#allocation5 + $0xc0] sm:$0xff]  ;;  %v88_v35 = vld [vmem:[#allocation5 + $0xc8] sm:$0xff]  ;;  %v101_v36 = vld [vmem:[#allocation5 + $0x130] sm:$0xff]  ;;  %v524_v38 = vpack.c.bf16 %v70_v32, %v69_v31  ;;  %p673_p0 = pnand %p672_p13, %p666_p10 }
  0x3f   :  { %517 = vmatpush3.bf16.msra.mxu0 %v516_v17  ;;  %v102_v37 = vld [vmem:[#allocation5 + $0x138] sm:$0xff]  ;;  %v526_v39 = vpack.c.bf16 %v88_v35, %v87_v34  ;;  %v71_v40 = vld [vmem:[#allocation5 + $0x40] sm:$0xff]  ;;  %v72_v41 = vld [vmem:[#allocation5 + $0x48] sm:$0xff] }
  0x40   :  { %519 = vmatprep.subr.bf16.mxu0 %v518_v20  ;;  %547 = vmatpush3.bf16.msra.mxu1 %v546_v24  ;;  %v552_v42 = vpack.c.bf16 %v102_v37, %v101_v36  ;;  %v89_v43 = vld [vmem:[#allocation5 + $0xd0] sm:$0xff]  ;;  %v90_v44 = vld [vmem:[#allocation5 + $0xd8] sm:$0xff]  ;;  %v103_v45 = vld [vmem:[#allocation5 + $0x140] sm:$0xff]  ;;  %v528_v48 = vpack.c.bf16 %v72_v41, %v71_v40 }
  0x41   :  { %548 = vmatprep.subr.bf16.mxu1 %v698_v0  ;;  %v104_v46 = vld [vmem:[#allocation5 + $0x148] sm:$0xff]  ;;  %v61_v47 = vld [vmem:[#allocation2 + $0x8] sm:$0xff]  ;;  %v530_v49 = vpack.c.bf16 %v90_v44, %v89_v43  ;;  %v74_v51 = vld [vmem:[#allocation5 + $0x58] sm:$0xff] }
  0x42   :  { %182 = vmatprep.mubr.f32.mxu0 %v61_v47  ;;  %v73_v50 = vld [vmem:[#allocation5 + $0x50] sm:$0xff]  ;;  %v555_v52 = vpack.c.bf16 %v104_v46, %v103_v45  ;;  %v91_v53 = vld [vmem:[#allocation5 + $0xe0] sm:$0xff]  ;;  %v92_v54 = vld [vmem:[#allocation5 + $0xe8] sm:$0xff] }
  0x43   :  { %521 = vmatpush3.bf16.msra.mxu0 %v520_v29  ;;  %v105_v55 = vld [vmem:[#allocation5 + $0x150] sm:$0xff]  ;;  %v106_v56 = vld [vmem:[#allocation5 + $0x158] sm:$0xff]  ;;  %v532_v57 = vpack.c.bf16 %v74_v51, %v73_v50  ;;  %v534_v58 = vpack.c.bf16 %v92_v54, %v91_v53  ;;  %v75_v59 = vld [vmem:[#allocation5 + $0x60] sm:$0xff] }
  0x44   :  { %523 = vmatprep.subr.bf16.mxu0 %v522_v30  ;;  %550 = vmatpush3.bf16.msra.mxu1 %v549_v33  ;;  %v76_v60 = vld [vmem:[#allocation5 + $0x68] sm:$0xff]  ;;  %v558_v61 = vpack.c.bf16 %v106_v56, %v105_v55  ;;  %v93_v62 = vld [vmem:[#allocation5 + $0xf0] sm:$0xff]  ;;  %v94_v63 = vld [vmem:[#allocation5 + $0xf8] sm:$0xff] }
  0x45   :  { %551 = vmatprep.subr.bf16.mxu1 %v698_v0  ;;  %v107_v2 = vld [vmem:[#allocation5 + $0x160] sm:$0xff]  ;;  %v108_v3 = vld [vmem:[#allocation5 + $0x168] sm:$0xff]  ;;  %v536_v4 = vpack.c.bf16 %v76_v60, %v75_v59  ;;  %v538_v5 = vpack.c.bf16 %v94_v63, %v93_v62  ;;  %v77_v6 = vld [vmem:[#allocation5 + $0x70] sm:$0xff] }
  0x46   :  { %v78_v7 = vld [vmem:[#allocation5 + $0x78] sm:$0xff]  ;;  %v561_v8 = vpack.c.bf16 %v108_v3, %v107_v2  ;;  %v109_v9 = vld [vmem:[#allocation5 + $0x170] sm:$0xff]  ;;  %v259_v12 = vld [vmem:[#allocation7] sm:$0xff] }
  0x47   :  { %525 = vmatpush3.bf16.msra.mxu0 %v524_v38  ;;  %v110_v10 = vld [vmem:[#allocation5 + $0x178] sm:$0xff]  ;;  %v540_v11 = vpack.c.bf16 %v78_v7, %v77_v6  ;;  %v260_v13 = vld [vmem:[#allocation7 + $0x8] sm:$0xff]  ;;  %v261_v17 = vld [vmem:[#allocation7 + $0x10] sm:$0xff] }
  0x48   :  { %527 = vmatprep.subr.bf16.mxu0 %v526_v39  ;;  %553 = vmatpush3.bf16.msra.mxu1 %v552_v42  ;;  %v564_v14 = vpack.c.bf16 %v110_v10, %v109_v9  ;;  %v60_v15 = vld [vmem:[#allocation2] sm:$0xff]  ;;  %v567_v16 = vpack.c.bf16 %v260_v13, %v259_v12  ;;  %v262_v18 = vld [vmem:[#allocation7 + $0x18] sm:$0xff]  ;;  %v263_v21 = vld [vmem:[#allocation7 + $0x20] sm:$0xff] }
  0x49   :  { %554 = vmatprep.subr.bf16.mxu1 %v698_v0  ;;  %v62_v19 = vld [vmem:[#allocation2 + $0x10] sm:$0xff]  ;;  %v570_v20 = vpack.c.bf16 %v262_v18, %v261_v17  ;;  %v264_v22 = vld [vmem:[#allocation7 + $0x28] sm:$0xff]  ;;  %v265_v24 = vld [vmem:[#allocation7 + $0x30] sm:$0xff] }
  0x4a   :  { %v573_v23 = vpack.c.bf16 %v264_v22, %v263_v21  ;;  %v266_v25 = vld [vmem:[#allocation7 + $0x38] sm:$0xff]  ;;  %v267_v27 = vld [vmem:[#allocation7 + $0x40] sm:$0xff]  ;;  %v268_v28 = vld [vmem:[#allocation7 + $0x48] sm:$0xff] }
  0x4b   :  { %529 = vmatpush3.bf16.msra.mxu0 %v528_v48  ;;  %v576_v26 = vpack.c.bf16 %v266_v25, %v265_v24  ;;  %v579_v29 = vpack.c.bf16 %v268_v28, %v267_v27  ;;  %v270_v30 = vld [vmem:[#allocation7 + $0x58] sm:$0xff]  ;;  %v271_v32 = vld [vmem:[#allocation7 + $0x60] sm:$0xff]  ;;  %v272_v33 = vld [vmem:[#allocation7 + $0x68] sm:$0xff] }
  0x4c   :  { %531 = vmatprep.subr.bf16.mxu0 %v530_v49  ;;  %556 = vmatpush3.bf16.msra.mxu1 %v555_v52  ;;  %v585_v34 = vpack.c.bf16 %v272_v33, %v271_v32  ;;  %v273_v35 = vld [vmem:[#allocation7 + $0x70] sm:$0xff]  ;;  %v274_v36 = vld [vmem:[#allocation7 + $0x78] sm:$0xff]  ;;  %v369_v40 = vld [vmem:[%s814_s2] ss:$0 sm:$0xff] }
  0x4d   :  { %557 = vmatprep.subr.bf16.mxu1 %v698_v0  ;;  %v588_v37 = vpack.c.bf16 %v274_v36, %v273_v35 }
  0x4f   :  { %533 = vmatpush3.bf16.msra.mxu0 %v532_v57 }
  0x50   :  { %535 = vmatprep.subr.bf16.mxu0 %v534_v58  ;;  %559 = vmatpush3.bf16.msra.mxu1 %v558_v61 }
  0x51   :  { %560 = vmatprep.subr.bf16.mxu1 %v698_v0 }
  0x53   :  { %537 = vmatpush3.bf16.msra.mxu0 %v536_v4 }
  0x54   :  { %539 = vmatprep.subr.bf16.mxu0 %v538_v5  ;;  %562 = vmatpush3.bf16.msra.mxu1 %v561_v8 }
  0x55   :  { %563 = vmatprep.subr.bf16.mxu1 %v698_v0 }
  0x57   :  { %541 = vmatpush3.bf16.msra.mxu0 %v540_v11 }
  0x58   :  { %566 = vmatprep.subr.bf16.mxu0 %v698_v0  ;;  %565 = vmatpush3.bf16.msra.mxu1 %v564_v14 }
  0x5a   :  { %183 = vmatmul.mubr.f32.vlgmr.msra.gmra.mrb[0].mxu0 %v60_v15 }
  0x5b   :  { %568 = vmatpush3.bf16.msra.mxu0 %v567_v16  ;;  %507 = vmatprep.mubr.msk.f32.mxu0 %vm699_vm0, %v700_v1  ;;  %v269_v1 = vld [vmem:[#allocation7 + $0x50] sm:$0xff] }
  0x5c   :  { %473 = vmatmul.mubr.f32.vlgmr.msra.gmra.mrb[0].mxu1 %v62_v19  ;;  %569 = vmatprep.subr.bf16.mxu0 %v698_v0  ;;  %v582_v31 = vpack.c.bf16 %v270_v30, %v269_v1 }
  0x5f   :  { %571 = vmatpush3.bf16.msra.mxu0 %v570_v20 }
  0x60   :  { %572 = vmatprep.subr.bf16.mxu0 %v698_v0 }
  0x63   :  { %574 = vmatpush3.bf16.msra.mxu0 %v573_v23 }
  0x64   :  { %575 = vmatprep.subr.bf16.mxu0 %v698_v0 }
  0x67   :  { %577 = vmatpush3.bf16.msra.mxu0 %v576_v26 }
  0x68   :  { %578 = vmatprep.subr.bf16.mxu0 %v698_v0 }
  0x6b   :  { %580 = vmatpush3.bf16.msra.mxu0 %v579_v29 }
  0x6c   :  { %581 = vmatprep.subr.bf16.mxu0 %v698_v0 }
  0x6f   :  { %583 = vmatpush3.bf16.msra.mxu0 %v582_v31 }
  0x70   :  { %584 = vmatprep.subr.bf16.mxu0 %v698_v0 }
  0x73   :  { %586 = vmatpush3.bf16.msra.mxu0 %v585_v34 }
  0x74   :  { %587 = vmatprep.subr.bf16.mxu0 %v698_v0  ;;  %v370_v0 = vld [vmem:[%s816_s4] ss:$0 sm:$0xff] }
  0x77   :  { %589 = vmatpush3.bf16.msra.mxu0 %v588_v37 }
 0x12d   :  { %v403_v38 = vpop.f32.mrb[0].mxu0 }
 0x12e   :  { %v404_v39 = vpop.f32.mrb[1].mxu0 }
 0x12f   :  { %v405_v41 = vadd.f32 %v404_v39, %v403_v38  ;;  %v254_v42 = vpop.f32.mrb[0].mxu1 }
 0x130   :  { %v474_v43 = vpop.f32.mrb[1].mxu1 }
 0x131   :  { %v185_v44 = vadd.f32 %v405_v41, %v369_v40 }
 0x133   :  { %v255_v45 = vadd.f32 %v254_v42, %v185_v44 }
 0x135   :  { %v258_v46 = vmax.f32 %v255_v45, 0.0 }
 0x137   :  { %508 = vmatmul.mubr.f32.vlgmr.msra.gmra.mrb[2].mxu0 %v258_v46 }
 0x20a   :  { %v348_v47 = vpop.f32.mrb[2].mxu0 }
 0x20b   :  { %v349_v48 = vadd.f32 %v370_v0, %v348_v47  ;;  %v509_v49 = vpop.f32.mrb[3].mxu0 }
 0x20d   :  { %352 = vst [vmem:[#allocation8] sm:$0xff] %v349_v48 }
 0x20e   :  { %676 = shalt.err (!%p673_p0)
}
 0x20f   :  { %s677_s11 = scalar_lea.hbm %s817_s5, 128 }
 0x210   :  { %p678_p1 = scmp.ne.s32.totalorder %s817_s5, %s677_s11  ;;  %p681_p2 = scmp.lt.u32.totalorder %s677_s11, %s817_s5 }
 0x212   :  { %p683_p3 = pnand %p681_p2, %p678_p1 }
 0x214   :  { %686 = shalt.err (!%p683_p3)
}
 0x215   :  { %362 = dma.vmem_to_hbm [thread:$0]  %s360_s8, 128, %s817_s5, [#allocation4]  }
 0x216   :  { %691 = dma.done.wait [#allocation4], 128  }
 0x217   :  { %692 = vsyncadd [#allocation4], 4294967168 }
 0x218   :  { %366 = vsyncpa [#allocation3], 1 }
 0x219   :  { %367 = vsyncpa [#allocation6], 1 }
 0x21a   :  { %368 = vsyncpa [#allocation4], 1 }

// kernel: tpu_custom_call.1
= control target key start
LH: loop header
LB: loop body
LE: loop exit
PB: predicated region body
PF: predicated region fallthrough
CT: control target
= control target key end

     0   :  { %10 = vsyncpa [#allocation3], 0  ;;  %s812_s0 = inlined_call_operand.hbm [shape: f32[8,384], index: 0, kind: input, shape index: {}]   ;;  %s813_s1 = inlined_call_operand.hbm [shape: f32[384,128], index: 1, kind: input, shape index: {}]   ;;  %s814_s2 = inlined_call_operand.vmem [shape: f32[1,128], index: 2, kind: input, shape index: {}]   ;;  %s815_s3 = inlined_call_operand.hbm [shape: f32[128,128], index: 3, kind: input, shape index: {}]   ;;  %s816_s4 = inlined_call_operand.vmem [shape: f32[1,128], index: 4, kind: input, shape index: {}]   ;;  %s817_s5 = inlined_call_operand.hbm [shape: f32[8,128], index: 5, kind: output, shape index: {}]  }
   0x1   :  { %11 = vsyncpa [#allocation6], 0 }
   0x2   :  { %12 = vsyncpa [#allocation4], 0  ;;  %s693_s18 = smov [#allocation5]   ;;  %s599_s22 = scalar_lea.hbm %s813_s1, 6144 }
   0x3   :  { %s28_s19 = sshll.u32 %s693_s18, 4  ;;  %p600_p0 = scmp.ne.s32.totalorder %s813_s1, %s599_s22  ;;  %s29_s19 = int_to_ptr.vmem [resolvable:$true] %s28_s19 }
   0x4   :  { %p603_p1 = scmp.lt.u32.totalorder %s599_s22, %s813_s1 }
   0x6   :  { %p605_p2 = pnand %p603_p1, %p600_p0 }
   0x8   :  { %608 = shalt.err (!%p605_p2)
}
   0x9   :  { %s609_s27 = scalar_lea.vmem %s29_s19, 6144  ;;  %p614_p4 = scmp.lt.s32.totalorder %s29_s19, %s29_s19 }
   0xa   :  { %p610_p3 = scmp.ne.s32.totalorder %s29_s19, %s609_s27  ;;  %p615_p5 = scmp.lt.s32.totalorder %s609_s27, %s609_s27 }
   0xc   :  { %p616_p6 = por %p615_p5, %p614_p4 }
   0xe   :  { %p617_p7 = pnand %p616_p6, %p610_p3 }
  0x10   :  { %620 = shalt.err (!%p617_p7)
}
  0x11   :  { %s694_s28 = smov 128   ;;  %s695_s29 = smov 8  }
  0x12   :  { %34 = dma.hbm_to_vmem [thread:$0]  %s813_s1, 6144, %s29_s19, [#allocation6], %s694_s28, %s694_s28, %s695_s29  }
  0x13   :  { %s696_s7 = smov [#allocation2]   ;;  %s697_s9 = smov [#allocation7]  }
  0x14   :  { %s19_s8 = sshll.u32 %s696_s7, 4  ;;  %s42_s10 = sshll.u32 %s697_s9, 4  ;;  %s20_s8 = int_to_ptr.vmem [resolvable:$true] %s19_s8  ;;  %s43_s10 = int_to_ptr.vmem [resolvable:$true] %s42_s10 }
  0x15   :  { %s621_s13 = scalar_lea.hbm %s812_s0, 384 }
  0x16   :  { %p622_p8 = scmp.ne.s32.totalorder %s812_s0, %s621_s13  ;;  %p625_p9 = scmp.lt.u32.totalorder %s621_s13, %s812_s0 }
  0x18   :  { %p627_p10 = pnand %p625_p9, %p622_p8 }
  0x1a   :  { %630 = shalt.err (!%p627_p10)
}
  0x1b   :  { %s631_s1 = scalar_lea.vmem %s20_s8, 384  ;;  %p636_p12 = scmp.lt.s32.totalorder %s20_s8, %s20_s8 }
  0x1c   :  { %p632_p11 = scmp.ne.s32.totalorder %s20_s8, %s631_s1  ;;  %p637_p13 = scmp.lt.s32.totalorder %s631_s1, %s631_s1 }
  0x1e   :  { %p638_p0 = por %p637_p13, %p636_p12 }
  0x20   :  { %p639_p1 = pnand %p638_p0, %p632_p11 }
  0x22   :  { %642 = shalt.err (!%p639_p1)
}
  0x23   :  { %22 = dma.hbm_to_vmem [thread:$0]  %s812_s0, 384, %s20_s8, [#allocation3]  }
  0x24   :  { %s643_s22 = scalar_lea.hbm %s815_s3, 2048 }
  0x25   :  { %p644_p2 = scmp.ne.s32.totalorder %s815_s3, %s643_s22  ;;  %p647_p3 = scmp.lt.u32.totalorder %s643_s22, %s815_s3 }
  0x27   :  { %p649_p4 = pnand %p647_p3, %p644_p2 }
  0x29   :  { %652 = shalt.err (!%p649_p4)
}
  0x2a   :  { %s653_s27 = scalar_lea.vmem %s43_s10, 2048  ;;  %p658_p6 = scmp.lt.s32.totalorder %s43_s10, %s43_s10 }
  0x2b   :  { %p654_p5 = scmp.ne.s32.totalorder %s43_s10, %s653_s27  ;;  %p659_p7 = scmp.lt.s32.totalorder %s653_s27, %s653_s27 }
  0x2d   :  { %p660_p8 = por %p659_p7, %p658_p6 }
  0x2f   :  { %p661_p9 = pnand %p660_p8, %p654_p5 }
  0x31   :  { %664 = shalt.err (!%p661_p9)
}
  0x32   :  { %48 = dma.hbm_to_vmem [thread:$0]  %s815_s3, 2048, %s43_s10, [#allocation6], %s694_s28, %s694_s28, %s695_s29  }
  0x33   :  { %687 = dma.done.wait [#allocation3], 384  }
  0x34   :  { %688 = vsyncadd [#allocation3], 4294966912 }
  0x35   :  { %689 = dma.done.wait [#allocation6], 8192  }
  0x36   :  { %690 = vsyncadd [#allocation6], 4294959104  ;;  %v698_v0 = vmov 0.0|0.0   ;;  %vm699_vm0 = vmmov 0   ;;  %v700_v1 = vmov 0.0   ;;  %v79_v2 = vld [vmem:[#allocation5 + $0x80] sm:$0xff] }
  0x37   :  { %542 = vmatprep.subr.bf16.mxu1 %v698_v0  ;;  %472 = vmatprep.mubr.msk.f32.mxu1 %vm699_vm0, %v700_v1  ;;  %v80_v3 = vld [vmem:[#allocation5 + $0x88] sm:$0xff]  ;;  %v63_v4 = vld [vmem:[#allocation5] sm:$0xff]  ;;  %v81_v7 = vld [vmem:[#allocation5 + $0x90] sm:$0xff]  ;;  %s701_s7 = smov [#allocation8]  }
  0x38   :  { %v510_v5 = vpack.c.bf16 %v80_v3, %v79_v2  ;;  %v64_v6 = vld [vmem:[#allocation5 + $0x8] sm:$0xff]  ;;  %v82_v8 = vld [vmem:[#allocation5 + $0x98] sm:$0xff]  ;;  %v65_v11 = vld [vmem:[#allocation5 + $0x10] sm:$0xff]  ;;  %s359_s8 = sshll.u32 %s701_s7, 4  ;;  %s360_s8 = int_to_ptr.vmem [resolvable:$true] %s359_s8 }
  0x39   :  { %v512_v9 = vpack.c.bf16 %v64_v6, %v63_v4  ;;  %v514_v10 = vpack.c.bf16 %v82_v8, %v81_v7  ;;  %v66_v12 = vld [vmem:[#allocation5 + $0x18] sm:$0xff]  ;;  %v95_v13 = vld [vmem:[#allocation5 + $0x100] sm:$0xff]  ;;  %v96_v14 = vld [vmem:[#allocation5 + $0x108] sm:$0xff]  ;;  %s665_s9 = scalar_lea.vmem %s360_s8, 128  ;;  %p670_p11 = scmp.lt.s32.totalorder %s360_s8, %s360_s8 }
  0x3a   :  { %511 = vmatprep.subr.bf16.mxu0 %v510_v5  ;;  %v83_v15 = vld [vmem:[#allocation5 + $0xa0] sm:$0xff]  ;;  %v84_v16 = vld [vmem:[#allocation5 + $0xa8] sm:$0xff]  ;;  %v516_v17 = vpack.c.bf16 %v66_v12, %v65_v11  ;;  %v543_v18 = vpack.c.bf16 %v96_v14, %v95_v13  ;;  %v97_v19 = vld [vmem:[#allocation5 + $0x110] sm:$0xff]  ;;  %p666_p10 = scmp.ne.s32.totalorder %s360_s8, %s665_s9  ;;  %p671_p12 = scmp.lt.s32.totalorder %s665_s9, %s665_s9 }
  0x3b   :  { %513 = vmatpush3.bf16.msra.mxu0 %v512_v9  ;;  %v518_v20 = vpack.c.bf16 %v84_v16, %v83_v15  ;;  %v67_v21 = vld [vmem:[#allocation5 + $0x20] sm:$0xff]  ;;  %v68_v22 = vld [vmem:[#allocation5 + $0x28] sm:$0xff]  ;;  %v98_v23 = vld [vmem:[#allocation5 + $0x118] sm:$0xff] }
  0x3c   :  { %515 = vmatprep.subr.bf16.mxu0 %v514_v10  ;;  %544 = vmatpush3.bf16.msra.mxu1 %v543_v18  ;;  %v546_v24 = vpack.c.bf16 %v98_v23, %v97_v19  ;;  %v85_v25 = vld [vmem:[#allocation5 + $0xb0] sm:$0xff]  ;;  %v86_v26 = vld [vmem:[#allocation5 + $0xb8] sm:$0xff]  ;;  %v99_v27 = vld [vmem:[#allocation5 + $0x120] sm:$0xff]  ;;  %v520_v29 = vpack.c.bf16 %v68_v22, %v67_v21  ;;  %p672_p13 = por %p671_p12, %p670_p11 }
  0x3d   :  { %545 = vmatprep.subr.bf16.mxu1 %v698_v0  ;;  %v100_v28 = vld [vmem:[#allocation5 + $0x128] sm:$0xff]  ;;  %v522_v30 = vpack.c.bf16 %v86_v26, %v85_v25  ;;  %v69_v31 = vld [vmem:[#allocation5 + $0x30] sm:$0xff]  ;;  %v70_v32 = vld [vmem:[#allocation5 + $0x38] sm:$0xff] }
  0x3e   :  { %v549_v33 = vpack.c.bf16 %v100_v28, %v99_v27  ;;  %v87_v34 = vld [vmem:[#allocation5 + $0xc0] sm:$0xff]  ;;  %v88_v35 = vld [vmem:[#allocation5 + $0xc8] sm:$0xff]  ;;  %v101_v36 = vld [vmem:[#allocation5 + $0x130] sm:$0xff]  ;;  %v524_v38 = vpack.c.bf16 %v70_v32, %v69_v31  ;;  %p673_p0 = pnand %p672_p13, %p666_p10 }
  0x3f   :  { %517 = vmatpush3.bf16.msra.mxu0 %v516_v17  ;;  %v102_v37 = vld [vmem:[#allocation5 + $0x138] sm:$0xff]  ;;  %v526_v39 = vpack.c.bf16 %v88_v35, %v87_v34  ;;  %v71_v40 = vld [vmem:[#allocation5 + $0x40] sm:$0xff]  ;;  %v72_v41 = vld [vmem:[#allocation5 + $0x48] sm:$0xff] }
  0x40   :  { %519 = vmatprep.subr.bf16.mxu0 %v518_v20  ;;  %547 = vmatpush3.bf16.msra.mxu1 %v546_v24  ;;  %v552_v42 = vpack.c.bf16 %v102_v37, %v101_v36  ;;  %v89_v43 = vld [vmem:[#allocation5 + $0xd0] sm:$0xff]  ;;  %v90_v44 = vld [vmem:[#allocation5 + $0xd8] sm:$0xff]  ;;  %v103_v45 = vld [vmem:[#allocation5 + $0x140] sm:$0xff]  ;;  %v528_v48 = vpack.c.bf16 %v72_v41, %v71_v40 }
  0x41   :  { %548 = vmatprep.subr.bf16.mxu1 %v698_v0  ;;  %v104_v46 = vld [vmem:[#allocation5 + $0x148] sm:$0xff]  ;;  %v61_v47 = vld [vmem:[#allocation2 + $0x8] sm:$0xff]  ;;  %v530_v49 = vpack.c.bf16 %v90_v44, %v89_v43  ;;  %v74_v51 = vld [vmem:[#allocation5 + $0x58] sm:$0xff] }
  0x42   :  { %182 = vmatprep.mubr.f32.mxu0 %v61_v47  ;;  %v73_v50 = vld [vmem:[#allocation5 + $0x50] sm:$0xff]  ;;  %v555_v52 = vpack.c.bf16 %v104_v46, %v103_v45  ;;  %v91_v53 = vld [vmem:[#allocation5 + $0xe0] sm:$0xff]  ;;  %v92_v54 = vld [vmem:[#allocation5 + $0xe8] sm:$0xff] }
  0x43   :  { %521 = vmatpush3.bf16.msra.mxu0 %v520_v29  ;;  %v105_v55 = vld [vmem:[#allocation5 + $0x150] sm:$0xff]  ;;  %v106_v56 = vld [vmem:[#allocation5 + $0x158] sm:$0xff]  ;;  %v532_v57 = vpack.c.bf16 %v74_v51, %v73_v50  ;;  %v534_v58 = vpack.c.bf16 %v92_v54, %v91_v53  ;;  %v75_v59 = vld [vmem:[#allocation5 + $0x60] sm:$0xff] }
  0x44   :  { %523 = vmatprep.subr.bf16.mxu0 %v522_v30  ;;  %550 = vmatpush3.bf16.msra.mxu1 %v549_v33  ;;  %v76_v60 = vld [vmem:[#allocation5 + $0x68] sm:$0xff]  ;;  %v558_v61 = vpack.c.bf16 %v106_v56, %v105_v55  ;;  %v93_v62 = vld [vmem:[#allocation5 + $0xf0] sm:$0xff]  ;;  %v94_v63 = vld [vmem:[#allocation5 + $0xf8] sm:$0xff] }
  0x45   :  { %551 = vmatprep.subr.bf16.mxu1 %v698_v0  ;;  %v107_v2 = vld [vmem:[#allocation5 + $0x160] sm:$0xff]  ;;  %v108_v3 = vld [vmem:[#allocation5 + $0x168] sm:$0xff]  ;;  %v536_v4 = vpack.c.bf16 %v76_v60, %v75_v59  ;;  %v538_v5 = vpack.c.bf16 %v94_v63, %v93_v62  ;;  %v77_v6 = vld [vmem:[#allocation5 + $0x70] sm:$0xff] }
  0x46   :  { %v78_v7 = vld [vmem:[#allocation5 + $0x78] sm:$0xff]  ;;  %v561_v8 = vpack.c.bf16 %v108_v3, %v107_v2  ;;  %v109_v9 = vld [vmem:[#allocation5 + $0x170] sm:$0xff]  ;;  %v259_v12 = vld [vmem:[#allocation7] sm:$0xff] }
  0x47   :  { %525 = vmatpush3.bf16.msra.mxu0 %v524_v38  ;;  %v110_v10 = vld [vmem:[#allocation5 + $0x178] sm:$0xff]  ;;  %v540_v11 = vpack.c.bf16 %v78_v7, %v77_v6  ;;  %v260_v13 = vld [vmem:[#allocation7 + $0x8] sm:$0xff]  ;;  %v261_v17 = vld [vmem:[#allocation7 + $0x10] sm:$0xff] }
  0x48   :  { %527 = vmatprep.subr.bf16.mxu0 %v526_v39  ;;  %553 = vmatpush3.bf16.msra.mxu1 %v552_v42  ;;  %v564_v14 = vpack.c.bf16 %v110_v10, %v109_v9  ;;  %v60_v15 = vld [vmem:[#allocation2] sm:$0xff]  ;;  %v567_v16 = vpack.c.bf16 %v260_v13, %v259_v12  ;;  %v262_v18 = vld [vmem:[#allocation7 + $0x18] sm:$0xff]  ;;  %v263_v21 = vld [vmem:[#allocation7 + $0x20] sm:$0xff] }
  0x49   :  { %554 = vmatprep.subr.bf16.mxu1 %v698_v0  ;;  %v62_v19 = vld [vmem:[#allocation2 + $0x10] sm:$0xff]  ;;  %v570_v20 = vpack.c.bf16 %v262_v18, %v261_v17  ;;  %v264_v22 = vld [vmem:[#allocation7 + $0x28] sm:$0xff]  ;;  %v265_v24 = vld [vmem:[#allocation7 + $0x30] sm:$0xff] }
  0x4a   :  { %v573_v23 = vpack.c.bf16 %v264_v22, %v263_v21  ;;  %v266_v25 = vld [vmem:[#allocation7 + $0x38] sm:$0xff]  ;;  %v267_v27 = vld [vmem:[#allocation7 + $0x40] sm:$0xff]  ;;  %v268_v28 = vld [vmem:[#allocation7 + $0x48] sm:$0xff] }
  0x4b   :  { %529 = vmatpush3.bf16.msra.mxu0 %v528_v48  ;;  %v576_v26 = vpack.c.bf16 %v266_v25, %v265_v24  ;;  %v579_v29 = vpack.c.bf16 %v268_v28, %v267_v27  ;;  %v270_v30 = vld [vmem:[#allocation7 + $0x58] sm:$0xff]  ;;  %v271_v32 = vld [vmem:[#allocation7 + $0x60] sm:$0xff]  ;;  %v272_v33 = vld [vmem:[#allocation7 + $0x68] sm:$0xff] }
  0x4c   :  { %531 = vmatprep.subr.bf16.mxu0 %v530_v49  ;;  %556 = vmatpush3.bf16.msra.mxu1 %v555_v52  ;;  %v585_v34 = vpack.c.bf16 %v272_v33, %v271_v32  ;;  %v273_v35 = vld [vmem:[#allocation7 + $0x70] sm:$0xff]  ;;  %v274_v36 = vld [vmem:[#allocation7 + $0x78] sm:$0xff]  ;;  %v369_v40 = vld [vmem:[%s814_s2] ss:$0 sm:$0xff] }
  0x4d   :  { %557 = vmatprep.subr.bf16.mxu1 %v698_v0  ;;  %v588_v37 = vpack.c.bf16 %v274_v36, %v273_v35 }
  0x4f   :  { %533 = vmatpush3.bf16.msra.mxu0 %v532_v57 }
  0x50   :  { %535 = vmatprep.subr.bf16.mxu0 %v534_v58  ;;  %559 = vmatpush3.bf16.msra.mxu1 %v558_v61 }
  0x51   :  { %560 = vmatprep.subr.bf16.mxu1 %v698_v0 }
  0x53   :  { %537 = vmatpush3.bf16.msra.mxu0 %v536_v4 }
  0x54   :  { %539 = vmatprep.subr.bf16.mxu0 %v538_v5  ;;  %562 = vmatpush3.bf16.msra.mxu1 %v561_v8 }
  0x55   :  { %563 = vmatprep.subr.bf16.mxu1 %v698_v0 }
  0x57   :  { %541 = vmatpush3.bf16.msra.mxu0 %v540_v11 }
  0x58   :  { %566 = vmatprep.subr.bf16.mxu0 %v698_v0  ;;  %565 = vmatpush3.bf16.msra.mxu1 %v564_v14 }
  0x5a   :  { %183 = vmatmul.mubr.f32.vlgmr.msra.gmra.mrb[0].mxu0 %v60_v15 }
  0x5b   :  { %568 = vmatpush3.bf16.msra.mxu0 %v567_v16  ;;  %507 = vmatprep.mubr.msk.f32.mxu0 %vm699_vm0, %v700_v1  ;;  %v269_v1 = vld [vmem:[#allocation7 + $0x50] sm:$0xff] }
  0x5c   :  { %473 = vmatmul.mubr.f32.vlgmr.msra.gmra.mrb[0].mxu1 %v62_v19  ;;  %569 = vmatprep.subr.bf16.mxu0 %v698_v0  ;;  %v582_v31 = vpack.c.bf16 %v270_v30, %v269_v1 }
  0x5f   :  { %571 = vmatpush3.bf16.msra.mxu0 %v570_v20 }
  0x60   :  { %572 = vmatprep.subr.bf16.mxu0 %v698_v0 }
  0x63   :  { %574 = vmatpush3.bf16.msra.mxu0 %v573_v23 }
  0x64   :  { %575 = vmatprep.subr.bf16.mxu0 %v698_v0 }
  0x67   :  { %577 = vmatpush3.bf16.msra.mxu0 %v576_v26 }
  0x68   :  { %578 = vmatprep.subr.bf16.mxu0 %v698_v0 }
  0x6b   :  { %580 = vmatpush3.bf16.msra.mxu0 %v579_v29 }
  0x6c   :  { %581 = vmatprep.subr.bf16.mxu0 %v698_v0 }
  0x6f   :  { %583 = vmatpush3.bf16.msra.mxu0 %v582_v31 }
  0x70   :  { %584 = vmatprep.subr.bf16.mxu0 %v698_v0 }
  0x73   :  { %586 = vmatpush3.bf16.msra.mxu0 %v585_v34 }
  0x74   :  { %587 = vmatprep.subr.bf16.mxu0 %v698_v0  ;;  %v370_v0 = vld [vmem:[%s816_s4] ss:$0 sm:$0xff] }
  0x77   :  { %589 = vmatpush3.bf16.msra.mxu0 %v588_v37 }
 0x12d   :  { %v403_v38 = vpop.f32.mrb[0].mxu0 }
 0x12e   :  { %v404_v39 = vpop.f32.mrb[1].mxu0 }
 0x12f   :  { %v405_v41 = vadd.f32 %v404_v39, %v403_v38  ;;  %v254_v42 = vpop.f32.mrb[0].mxu1 }
 0x130   :  { %v474_v43 = vpop.f32.mrb[1].mxu1 }
 0x131   :  { %v185_v44 = vadd.f32 %v405_v41, %v369_v40 }
 0x133   :  { %v255_v45 = vadd.f32 %v254_v42, %v185_v44 }
 0x135   :  { %v258_v46 = vmax.f32 %v255_v45, 0.0 }
 0x137   :  { %508 = vmatmul.mubr.f32.vlgmr.msra.gmra.mrb[2].mxu0 %v258_v46 }
 0x20a   :  { %v348_v47 = vpop.f32.mrb[2].mxu0 }
 0x20b   :  { %v349_v48 = vadd.f32 %v370_v0, %v348_v47  ;;  %v509_v49 = vpop.f32.mrb[3].mxu0 }
 0x20d   :  { %352 = vst [vmem:[#allocation8] sm:$0xff] %v349_v48 }
 0x20e   :  { %676 = shalt.err (!%p673_p0)
}
 0x20f   :  { %s677_s11 = scalar_lea.hbm %s817_s5, 128 }
 0x210   :  { %p678_p1 = scmp.ne.s32.totalorder %s817_s5, %s677_s11  ;;  %p681_p2 = scmp.lt.u32.totalorder %s677_s11, %s817_s5 }
 0x212   :  { %p683_p3 = pnand %p681_p2, %p678_p1 }
 0x214   :  { %686 = shalt.err (!%p683_p3)
}
 0x215   :  { %362 = dma.vmem_to_hbm [thread:$0]  %s360_s8, 128, %s817_s5, [#allocation4]  }
 0x216   :  { %691 = dma.done.wait [#allocation4], 128  }
 0x217   :  { %692 = vsyncadd [#allocation4], 4294967168 }
 0x218   :  { %366 = vsyncpa [#allocation3], 1 }
 0x219   :  { %367 = vsyncpa [#allocation6], 1 }
 0x21a   :  { %368 = vsyncpa [#allocation4], 1 }

</bundles_post_ra>
